<compile_context>
chip_gen: v7x
topology: tpu7x:2x2x1
jax: 0.10.0
libtpu: 0.0.40
codegen_flags: <defaults>
</compile_context>

<pallas_src>
import functools

import jax
import jax.numpy as jnp
from jax.experimental import pallas as pl
from jax.experimental.pallas import tpu as pltpu

GRID_DIM = 8          # G  -> G^3 = 512 voxels
SIGMA = 0.3
TN_MAX = 2048         # points per grid step (lane-dense, multiple of 128)


def _p2v_kernel(g_ref, x_ref, o_ref, *, batch):
    # g_ref: (TM, 8)     augmented voxel table (j-invariant -> stays resident)
    # x_ref: (B, 8, TN)  augmented point tile, points lane-dense
    # o_ref: (B, TM)     density for this voxel tile; resident across the N axis
    j = pl.program_id(1)            # point tile index ("arbitrary" reduction)

    @pl.when(j == 0)
    def _():
        o_ref[...] = jnp.zeros_like(o_ref)

    g_aug = g_ref[...]                                               # (TM, 8)

    dens = []
    for b in range(batch):
        # MXU: d2s = 2*s2*(g.p) - s2*|p|^2 - s2*|g|^2 = -s2*||g - p||^2.
        # All scales and squared norms are folded into the augmented operands,
        # so no per-element VALU work remains before the exp.
        d2s = jnp.dot(g_aug, x_ref[b],
                      preferred_element_type=jnp.float32)            # (TM, TN)
        # EUP exp + cheap lane-axis reduction (well below the exp cost).
        dens.append(jnp.sum(jnp.exp(d2s), axis=-1))                  # (TM,)

    o_ref[...] += jnp.stack(dens, axis=0)                            # (B, TM)


def make_grid(grid_dim):
    """Replicates np.mgrid[-1:1:Gj, -1:1:Gj, -1:1:Gj] -> (3, G, G, G)."""
    ax = jnp.linspace(-1.0, 1.0, grid_dim, dtype=jnp.float32)
    gx, gy, gz = jnp.meshgrid(ax, ax, ax, indexing="ij")
    return jnp.stack([gx, gy, gz], axis=0)


def _round_up(x, m):
    return (x + m - 1) // m * m


@functools.partial(jax.jit, static_argnames=("grid_dim", "sigma"))
def p2v_toy_forward(x, grid_dim=GRID_DIM, sigma=SIGMA):
    """x: (B, N, 3) float32 point cloud -> (B, G, G, G) voxel density."""
    B, N, _ = x.shape
    G = grid_dim
    M = G * G * G
    s2 = 1.0 / (2.0 * sigma * sigma)

    # ---- voxel-side table: g_aug[m] = [2*s2*g, 1, -s2*|g|^2, 0, 0, 0] ----
    grid_pts = make_grid(G).reshape(3, M).T.astype(jnp.float32)      # (M, 3)
    g_aug = jnp.concatenate(
        [2.0 * s2 * grid_pts,
         jnp.ones((M, 1), jnp.float32),
         -s2 * jnp.sum(grid_pts * grid_pts, axis=1, keepdims=True),
         jnp.zeros((M, 3), jnp.float32)], axis=1)                    # (M, 8)

    # Pad the voxel axis to a multiple of 128 (padded rows are all-zero ->
    # finite garbage that is sliced off below), then pick a tile that gives
    # several parallel blocks (>= 2 per v7x TensorCore when M allows it).
    M_pad = _round_up(M, 128)
    if M_pad != M:
        g_aug = jnp.pad(g_aug, ((0, M_pad - M), (0, 0)))
    TM = min(512, max(128, (M_pad // 4) // 128 * 128))
    if M_pad % TM:
        TM = 128                                                     # always divides

    # Point tile: lane-dense, bounded so the per-step (B, TM, TN) f32
    # intermediates stay well under the v7x scoped-VMEM budget.
    tn_cap = max(128, ((8 << 20) // (4 * B * TM)) // 128 * 128)
    TN = min(TN_MAX, tn_cap, _round_up(N, 128))
    N_pad = _round_up(N, TN)

    # ---- point-side tensor: x_aug[b,:,n] = [p, -s2*|p|^2, 1, 0, 0, 0] ----
    xt = jnp.transpose(x, (0, 2, 1)).astype(jnp.float32)             # (B, 3, N)
    pn2 = -s2 * jnp.sum(x * x, axis=-1)[:, None, :]                  # (B, 1, N)
    if N_pad != N:
        xt = jnp.pad(xt, ((0, 0), (0, 0), (0, N_pad - N)))
        # Padded points get -1e30 in the |p|^2 slot -> exp underflows to 0.
        pn2 = jnp.pad(pn2, ((0, 0), (0, 0), (0, N_pad - N)),
                      constant_values=-1e30)
    x_aug = jnp.concatenate(
        [xt, pn2,
         jnp.ones((B, 1, N_pad), jnp.float32),
         jnp.zeros((B, 3, N_pad), jnp.float32)], axis=1)             # (B, 8, N_pad)

    kernel = functools.partial(_p2v_kernel, batch=B)

    out_flat = pl.pallas_call(
        kernel,
        out_shape=jax.ShapeDtypeStruct((B, M_pad), jnp.float32),
        grid_spec=pltpu.PrefetchScalarGridSpec(
            num_scalar_prefetch=0,
            grid=(M_pad // TM, N_pad // TN),
            in_specs=[
                pl.BlockSpec((TM, 8), lambda i, j: (i, 0)),          # voxel table
                pl.BlockSpec((B, 8, TN), lambda i, j: (0, 0, j)),    # point tile
            ],
            out_specs=pl.BlockSpec((B, TM), lambda i, j: (0, i)),    # resident over j
        ),
        compiler_params=pltpu.CompilerParams(
            dimension_semantics=("parallel", "arbitrary"),
        ),
    )(g_aug, x_aug)

    return out_flat[:, :M].reshape(B, G, G, G)


def p2v_toy_reference(x, grid_dim=GRID_DIM, sigma=SIGMA):
    """Pure-JAX reference for correctness checking."""
    B = x.shape[0]
    G = grid_dim
    grid = make_grid(G).reshape(3, -1).T                             # (M, 3)
    d2 = jnp.sum(
        (grid[None, :, None, :] - x[:, None, :, :]) ** 2, axis=-1
    )                                                                # (B, M, N)
    dens = jnp.sum(jnp.exp(-d2 / (2.0 * sigma * sigma)), axis=-1)
    return dens.reshape(B, G, G, G)


if __name__ == "__main__":
    key = jax.random.PRNGKey(0)
    B, N = 2, 128
    # Deterministic synthetic point cloud in [-1, 1]^3.
    x = jax.random.uniform(key, (B, N, 3), dtype=jnp.float32,
                           minval=-1.0, maxval=1.0)

    out = p2v_toy_forward(x)
    out = jax.block_until_ready(out)

    ref = p2v_toy_reference(x)
    assert out.shape == (B, GRID_DIM, GRID_DIM, GRID_DIM), out.shape
    # NOTE: the MXU |g|^2+|p|^2-2g.p form has ~1e-5 absolute error in the
    # scaled distance (O(1) coords), i.e. <~1e-4 in the density -- well inside
    # the 1e-3 tolerance.
    err = float(jnp.max(jnp.abs(out - ref)))
    if err < 1e-3:
        print("KERNEL_OK")
    else:
        raise SystemExit(f"mismatch vs reference: max abs err {err}")
</pallas_src>

<mosaic_0001>
module attributes {stable_mosaic.version = 11 : i64} {
  func.func @_p2v_kernel(%arg0: i32, %arg1: i32, %arg2: memref<128x8xf32, #tpu.memory_space<vmem>>, %arg3: memref<2x8x128xf32, #tpu.memory_space<vmem>>, %arg4: memref<2x128xf32, #tpu.memory_space<vmem>>) attributes {dimension_semantics = [#tpu.dimension_semantics<parallel>, #tpu.dimension_semantics<arbitrary>], iteration_bounds = array<i64: 4, 1>, scalar_prefetch = 0 : i64, scratch_operands = 0 : i64, tpu.core_type = #tpu.core_type<tc>, window_params = [{transform_indices = @transform_0, window_bounds = array<i64: 128, 8>}, {transform_indices = @transform_1, window_bounds = array<i64: 2, 8, 128>}, {transform_indices = @transform_2, window_bounds = array<i64: 2, 128>}]} {
    %c0_i32 = arith.constant 0 : i32
    %0 = arith.cmpi eq, %arg1, %c0_i32 : i32
    %1 = arith.extui %0 : i1 to i32
    %c0_i32_0 = arith.constant 0 : i32
    %2 = arith.cmpi ne, %1, %c0_i32_0 : i32
    scf.if %2 {
      %cst_14 = arith.constant 0.000000e+00 : f32
      %20 = vector.broadcast %cst_14 : f32 to vector<2x128xf32>
      %c0_15 = arith.constant 0 : index
      %c0_16 = arith.constant 0 : index
      %21 = vector.load %arg4[%c0_15, %c0_16] : memref<2x128xf32, #tpu.memory_space<vmem>>, vector<2x128xf32>
      tpu.vector_store %arg4[%c0_15, %c0_16], %20 {strides = array<i32>} : memref<2x128xf32, #tpu.memory_space<vmem>>, vector<2x128xf32>,
    } else {
    }
    %c0 = arith.constant 0 : index
    %c0_1 = arith.constant 0 : index
    %3 = vector.load %arg2[%c0, %c0_1] : memref<128x8xf32, #tpu.memory_space<vmem>>, vector<128x8xf32>
    %c0_2 = arith.constant 0 : index
    %c0_3 = arith.constant 0 : index
    %c0_4 = arith.constant 0 : index
    %4 = vector.load %arg3[%c0_2, %c0_3, %c0_4] : memref<2x8x128xf32, #tpu.memory_space<vmem>>, vector<1x8x128xf32>
    %5 = vector.shape_cast %4 : vector<1x8x128xf32> to vector<8x128xf32>
    %cst = arith.constant dense<0.000000e+00> : vector<128x128xf32>
    %6 = tpu.matmul %3, %5, %cst {dimension_numbers = #tpu.dot_dimension_numbers<[1], [0], [0], [1], [0, 0, 1, 1], [], []>} : vector<128x8xf32>, vector<8x128xf32>, vector<128x128xf32> -> vector<128x128xf32>
    %7 = math.exp %6 : vector<128x128xf32>
    %cst_5 = arith.constant dense<0.000000e+00> : vector<128xf32>
    %8 = vector.multi_reduction <add>, %7, %cst_5 [1] : vector<128x128xf32> to vector<128xf32>
    %c1 = arith.constant 1 : index
    %c0_6 = arith.constant 0 : index
    %c0_7 = arith.constant 0 : index
    %9 = vector.load %arg3[%c1, %c0_6, %c0_7] : memref<2x8x128xf32, #tpu.memory_space<vmem>>, vector<1x8x128xf32>
    %10 = vector.shape_cast %9 : vector<1x8x128xf32> to vector<8x128xf32>
    %cst_8 = arith.constant dense<0.000000e+00> : vector<128x128xf32>
    %11 = tpu.matmul %3, %10, %cst_8 {dimension_numbers = #tpu.dot_dimension_numbers<[1], [0], [0], [1], [0, 0, 1, 1], [], []>} : vector<128x8xf32>, vector<8x128xf32>, vector<128x128xf32> -> vector<128x128xf32>
    %12 = math.exp %11 : vector<128x128xf32>
    %cst_9 = arith.constant dense<0.000000e+00> : vector<128xf32>
    %13 = vector.multi_reduction <add>, %12, %cst_9 [1] : vector<128x128xf32> to vector<128xf32>
    %c0_10 = arith.constant 0 : index
    %c0_11 = arith.constant 0 : index
    %14 = vector.load %arg4[%c0_10, %c0_11] : memref<2x128xf32, #tpu.memory_space<vmem>>, vector<2x128xf32>
    %15 = vector.shape_cast %8 : vector<128xf32> to vector<1x128xf32>
    %16 = vector.shape_cast %13 : vector<128xf32> to vector<1x128xf32>
    %17 = tpu.concatenate %15, %16 in 0 : vector<1x128xf32>, vector<1x128xf32> -> vector<2x128xf32>
    %18 = arith.addf %14, %17 : vector<2x128xf32>
    %c0_12 = arith.constant 0 : index
    %c0_13 = arith.constant 0 : index
    %19 = vector.load %arg4[%c0_12, %c0_13] : memref<2x128xf32, #tpu.memory_space<vmem>>, vector<2x128xf32>
    tpu.vector_store %arg4[%c0_12, %c0_13], %18 {strides = array<i32>} : memref<2x128xf32, #tpu.memory_space<vmem>>, vector<2x128xf32>,
    return
  }
  func.func @transform_0(%arg0: i32, %arg1: i32) -> (i32, i32) {
    %c0_i32 = arith.constant 0 : i32
    %c0_i32_0 = arith.constant 0 : i32
    return %arg0, %c0_i32 : i32, i32
  }
  func.func @transform_1(%arg0: i32, %arg1: i32) -> (i32, i32, i32) {
    %c0_i32 = arith.constant 0 : i32
    %c0_i32_0 = arith.constant 0 : i32
    %c0_i32_1 = arith.constant 0 : i32
    return %c0_i32, %c0_i32_0, %arg1 : i32, i32, i32
  }
  func.func @transform_2(%arg0: i32, %arg1: i32) -> (i32, i32) {
    %c0_i32 = arith.constant 0 : i32
    %c0_i32_0 = arith.constant 0 : i32
    return %c0_i32, %arg0 : i32, i32
  }
}

</mosaic_0001>

<bundles_post_ra>
// kernel: p2v_toy_forward.1
= control target key start
LH: loop header
LB: loop body
LE: loop exit
PB: predicated region body
PF: predicated region fallthrough
CT: control target
= control target key end

     0   :  { %s1229_s9 = smov 0   ;;  %s1231_s10 = smov 0   ;;  %s1409_s0 = inlined_call_operand.vmem [shape: f32[512,8], index: 0, kind: input, shape index: {}]   ;;  %s1410_s1 = inlined_call_operand.vmem [shape: f32[2,8,128], index: 1, kind: input, shape index: {}]   ;;  %s1411_s2 = inlined_call_operand.vmem [shape: f32[2,512], index: 2, kind: output, shape index: {}]  }
   0x1   :  { %s1233_s11 = smov 0  }
   0x2 LB: > { %s24_s12 = sadd.s32 1, %s1207_s10  ;;  %p975_p0 = scmp.ge.s32.totalorder %s1211_s11, 1  ;;  %s1211_s11 = sphi %s1233_s11, %s12_s11   ;;  %s1207_s10 = sphi %s1231_s10, %s1413_s10   ;;  %s1203_s9 = sphi %s1229_s9, %s1412_s9  }
   0x3   : > { %p26_p1 = scmp.ge.s32.totalorder %s24_s12, 4  ;;  %p134_p2 = scmp.lt.s32.totalorder %s1211_s11, 5 }
   0x5   : > { %s1415_s12 = smov (%p26_p1, %s24_s12), 0  ;;  %p135_p3 = pnand %p975_p0, %p134_p2 }
   0x6   : > { %v194_v0 = vld [vmem:[%s1410_s1] sm:$0xff] (!%p135_p3)  ;;  %v995_v1 = vld [vmem:[%s1410_s1 + $0x8] sm:$0xff] (!%p135_p3)  ;;  %s976_s17 = sshll.u32 (!%p135_p3), %s1203_s9, 4  ;;  %vm195_vm0 = vcmask (!%p135_p3), 64512   ;;  %p169_p5 = scmp.lt.s32.totalorder (!%p135_p3), %s1203_s9, 3  ;;  %vm692_vm1 = vcmask (!%p135_p3), 130112  }
   0x7   : > { %138 = sbr.rel (%p135_p3) target bundleno = 454 (0x1c6), region = 28  ;;  %1048 = vmatprep.subr.mxu0 (!%p135_p3), %v194_v0  ;;  %1074 = vmatprep.subr.mxu1 (!%p135_p3), %v995_v1  ;;  %p160_p4 = scmp.lt.s32.totalorder (!%p135_p3), %s976_s17, 63  ;;  %vm699_vm2 = vcmask (!%p135_p3), 195712   ;;  %vm706_vm3 = vcmask (!%p135_p3), 261312   ;;  %vm713_vm4 = vcmask (!%p135_p3), 326912   ;;  %vm720_vm5 = vcmask (!%p135_p3), 392512  }
   0x8   : > { %1049 = vmatpush3.msra.mxu0 (!%p135_p3), %v194_v0  ;;  %1075 = vmatpush3.msra.mxu1 (!%p135_p3), %v995_v1  ;;  %vm727_vm6 = vcmask (!%p135_p3), 458112   ;;  %vm734_vm7 = vcmask (!%p135_p3), 523712   ;;  %vm741_vm8 = vcmask (!%p135_p3), 589312   ;;  %vm748_vm9 = vcmask (!%p135_p3), 654912  }
   0x9   : > { %vm755_vm10 = vcmask (!%p135_p3), 720512   ;;  %vm762_vm11 = vcmask (!%p135_p3), 786112   ;;  %vm769_vm12 = vcmask (!%p135_p3), 851712   ;;  %vm776_vm13 = vcmask (!%p135_p3), 917312  }
   0xa   : > { %vm783_vm14 = vcmask (!%p135_p3), 982912   ;;  %vm790_vm15 = vcmask (!%p135_p3), 1048512  }
   0xe   : > { %s1417_s17 = smov (!%p160_p4, %s976_s17), 63  ;;  %s1419_s9 = smov (!%p169_p5, %s1203_s9), 3 }
   0xf   : > { %s977_s18 = sshll.u32 %s1417_s17, 3  ;;  %s978_s22 = sshll.u32 %s1419_s9, 1 }
  0x10   : > { %s1259_s21 = scalar_lea.vmem %s1409_s0, %s977_s18  ;;  %s1317_s25 = scalar_lea.vmem %s1411_s2, %s978_s22 }
  0x11   : > { %v178_v2 = vld [vmem:[%s1259_s21] sm:$0xff]  ;;  %v179_v3 = vld [vmem:[%s1259_s21 + $0x8] sm:$0xff]  ;;  %v180_v4 = vld [vmem:[%s1259_s21 + $0x10] sm:$0xff] }
  0x12   : > { %1050 = vmatprep.mubr.msk.f32.mxu0 %vm195_vm0, %v178_v2  ;;  %1076 = vmatprep.mubr.msk.f32.mxu1 %vm195_vm0, %v178_v2  ;;  %v181_v5 = vld [vmem:[%s1259_s21 + $0x18] sm:$0xff]  ;;  %v182_v6 = vld [vmem:[%s1259_s21 + $0x20] sm:$0xff]  ;;  %v183_v7 = vld [vmem:[%s1259_s21 + $0x28] sm:$0xff] }
  0x13   : > { %1051 = vmatmul.mubr.msk.f32.vlgmr.msra.gmra.mrb[0].mxu0 %vm195_vm0, %v179_v3  ;;  %1077 = vmatmul.mubr.msk.f32.vlgmr.msra.gmra.mrb[0].mxu1 %vm195_vm0, %v179_v3  ;;  %v184_v8 = vld [vmem:[%s1259_s21 + $0x30] sm:$0xff]  ;;  %v185_v9 = vld [vmem:[%s1259_s21 + $0x38] sm:$0xff]  ;;  %v186_v10 = vld [vmem:[%s1259_s21 + $0x40] sm:$0xff] }
  0x14   : > { %1053 = vmatprep.mubr.msk.f32.mxu0 %vm195_vm0, %v180_v4  ;;  %1079 = vmatprep.mubr.msk.f32.mxu1 %vm195_vm0, %v180_v4  ;;  %v187_v11 = vld [vmem:[%s1259_s21 + $0x48] sm:$0xff]  ;;  %v188_v12 = vld [vmem:[%s1259_s21 + $0x50] sm:$0xff]  ;;  %v189_v13 = vld [vmem:[%s1259_s21 + $0x58] sm:$0xff] }
  0x15   : > { %v190_v14 = vld [vmem:[%s1259_s21 + $0x60] sm:$0xff]  ;;  %v191_v15 = vld [vmem:[%s1259_s21 + $0x68] sm:$0xff]  ;;  %v192_v16 = vld [vmem:[%s1259_s21 + $0x70] sm:$0xff] }
  0x16   : > { %v193_v17 = vld [vmem:[%s1259_s21 + $0x78] sm:$0xff] }
  0x17   : > { %1054 = vmatmul.mubr.msk.f32.gmra.mrb[2].mxu0 %vm195_vm0, %v181_v5  ;;  %1080 = vmatmul.mubr.msk.f32.gmra.mrb[2].mxu1 %vm195_vm0, %v181_v5 }
  0x18   : > { %1056 = vmatprep.mubr.msk.f32.mxu0 %vm195_vm0, %v182_v6  ;;  %1082 = vmatprep.mubr.msk.f32.mxu1 %vm195_vm0, %v182_v6 }
  0x1b   : > { %1057 = vmatmul.mubr.msk.f32.gmra.mrb[4].mxu0 %vm195_vm0, %v183_v7  ;;  %1083 = vmatmul.mubr.msk.f32.gmra.mrb[4].mxu1 %vm195_vm0, %v183_v7 }
  0x1c   : > { %1059 = vmatprep.mubr.msk.f32.mxu0 %vm195_vm0, %v184_v8  ;;  %1085 = vmatprep.mubr.msk.f32.mxu1 %vm195_vm0, %v184_v8 }
  0x1f   : > { %1060 = vmatmul.mubr.msk.f32.gmra.mrb[6].mxu0 %vm195_vm0, %v185_v9  ;;  %1086 = vmatmul.mubr.msk.f32.gmra.mrb[6].mxu1 %vm195_vm0, %v185_v9 }
  0x20   : > { %1062 = vmatprep.mubr.msk.f32.mxu0 %vm195_vm0, %v186_v10  ;;  %1088 = vmatprep.mubr.msk.f32.mxu1 %vm195_vm0, %v186_v10 }
  0x23   : > { %1063 = vmatmul.mubr.msk.f32.gmra.mrb[8].mxu0 %vm195_vm0, %v187_v11  ;;  %1089 = vmatmul.mubr.msk.f32.gmra.mrb[8].mxu1 %vm195_vm0, %v187_v11 }
  0x24   : > { %1065 = vmatprep.mubr.msk.f32.mxu0 %vm195_vm0, %v188_v12  ;;  %1091 = vmatprep.mubr.msk.f32.mxu1 %vm195_vm0, %v188_v12 }
  0x27   : > { %1066 = vmatmul.mubr.msk.f32.gmra.mrb[10].mxu0 %vm195_vm0, %v189_v13  ;;  %1092 = vmatmul.mubr.msk.f32.gmra.mrb[10].mxu1 %vm195_vm0, %v189_v13 }
  0x28   : > { %1068 = vmatprep.mubr.msk.f32.mxu0 %vm195_vm0, %v190_v14  ;;  %1094 = vmatprep.mubr.msk.f32.mxu1 %vm195_vm0, %v190_v14 }
  0x2b   : > { %1069 = vmatmul.mubr.msk.f32.gmra.mrb[12].mxu0 %vm195_vm0, %v191_v15  ;;  %1095 = vmatmul.mubr.msk.f32.gmra.mrb[12].mxu1 %vm195_vm0, %v191_v15 }
  0x2c   : > { %1071 = vmatprep.mubr.msk.f32.mxu0 %vm195_vm0, %v192_v16  ;;  %1097 = vmatprep.mubr.msk.f32.mxu1 %vm195_vm0, %v192_v16 }
  0x2f   : > { %1072 = vmatmul.mubr.msk.f32.gmra.mrb[14].mxu0 %vm195_vm0, %v193_v17  ;;  %1098 = vmatmul.mubr.msk.f32.gmra.mrb[14].mxu1 %vm195_vm0, %v193_v17  ;;  %vm889_vm0 = vcmask 1040384  }
  0xe6   : > { %v1052_v18 = vpop.f32.mrb[0].mxu0  ;;  %v1078_v19 = vpop.f32.mrb[0].mxu1 }
  0xe7   : > { %v391_v20 = vmul.f32 1.442695, %v1052_v18  ;;  %v602_v21 = vmul.f32 1.442695, %v1078_v19  ;;  %v310_v22 = vpop.f32.mrb[1].mxu0  ;;  %v521_v23 = vpop.f32.mrb[1].mxu1 }
  0xe8   : > { %v389_v24 = vmul.f32 1.442695, %v310_v22  ;;  %v600_v25 = vmul.f32 1.442695, %v521_v23 }
  0xe9   : > { %1125 = vpow2.f32 %v391_v20 }
  0xea   : > { %1127 = vpow2.f32 %v602_v21  ;;  %v1055_v26 = vpop.f32.mrb[2].mxu0  ;;  %v1081_v27 = vpop.f32.mrb[2].mxu1 }
  0xeb   : > { %v395_v28 = vmul.f32 1.442695, %v1055_v26  ;;  %v320_v29 = vpop.f32.mrb[3].mxu0  ;;  %v531_v30 = vpop.f32.mrb[3].mxu1  ;;  %v606_v31 = vmul.f32 1.442695, %v1081_v27  ;;  %1129 = vpow2.f32 %v389_v24 }
  0xec   : > { %1131 = vpow2.f32 %v600_v25  ;;  %v393_v36 = vmul.f32 1.442695, %v320_v29  ;;  %v604_v37 = vmul.f32 1.442695, %v531_v30 }
  0xed   : > { %1133 = vpow2.f32 %v395_v28 }
  0xee   : > { %v1058_v32 = vpop.f32.mrb[4].mxu0  ;;  %v1084_v33 = vpop.f32.mrb[4].mxu1  ;;  %1135 = vpow2.f32 %v606_v31 }
  0xef   : > { %v330_v34 = vpop.f32.mrb[5].mxu0  ;;  %v541_v35 = vpop.f32.mrb[5].mxu1  ;;  %v399_v41 = vmul.f32 1.442695, %v1058_v32  ;;  %v610_v45 = vmul.f32 1.442695, %v1084_v33  ;;  %1137 = vpow2.f32 %v393_v36 }
  0xf0   : > { %1139 = vpow2.f32 %v604_v37  ;;  %v397_v53 = vmul.f32 1.442695, %v330_v34  ;;  %v608_v55 = vmul.f32 1.442695, %v541_v35 }
  0xf1   : > { %1141 = vpow2.f32 %v399_v41 }
  0xf2   : > { %v1061_v38 = vpop.f32.mrb[6].mxu0  ;;  %v1087_v39 = vpop.f32.mrb[6].mxu1  ;;  %1143 = vpow2.f32 %v610_v45 }
  0xf3   : > { %v1126_v40 = vpop.eup %1125  ;;  %v340_v42 = vpop.f32.mrb[7].mxu0  ;;  %v403_v58 = vmul.f32 1.442695, %v1061_v38  ;;  %v614_v61 = vmul.f32 1.442695, %v1087_v39  ;;  %1145 = vpow2.f32 %v397_v53 }
  0xf4   : > { %v551_v43 = vpop.f32.mrb[7].mxu1  ;;  %v1128_v44 = vpop.eup %1127  ;;  %423 = vadd.xlane.f32.xlu0 %v1126_v40  ;;  %1147 = vpow2.f32 %v608_v55  ;;  %v401_v5 = vmul.f32 1.442695, %v340_v42 }
  0xf5   : > { %634 = vadd.xlane.f32.xlu1 %v1128_v44  ;;  %v1130_v48 = vpop.eup %1129  ;;  %1149 = vpow2.f32 %v403_v58  ;;  %v612_v7 = vmul.f32 1.442695, %v551_v43 }
  0xf6   : > { %v1064_v46 = vpop.f32.mrb[8].mxu0  ;;  %v1090_v47 = vpop.f32.mrb[8].mxu1  ;;  %1151 = vpow2.f32 %v614_v61  ;;  %v681_v61 = vlaneseq }
  0xf7   : > { %v350_v49 = vpop.f32.mrb[9].mxu0  ;;  %v561_v50 = vpop.f32.mrb[9].mxu1  ;;  %v407_v10 = vmul.f32 1.442695, %v1064_v46  ;;  %v618_v13 = vmul.f32 1.442695, %v1090_v47  ;;  %1153 = vpow2.f32 %v401_v5 }
  0xf8   : > { %v1132_v51 = vpop.eup %1131  ;;  %421 = vadd.xlane.f32.xlu0 %v1130_v48  ;;  %1155 = vpow2.f32 %v612_v7  ;;  %v405_v17 = vmul.f32 1.442695, %v350_v49  ;;  %v616_v19 = vmul.f32 1.442695, %v561_v50  ;;  %v1213_v50 = vmov 0.0  }
  0xf9   : > { %v1134_v52 = vpop.eup %1133  ;;  %632 = vadd.xlane.f32.xlu1 %v1132_v51  ;;  %1157 = vpow2.f32 %v407_v10  ;;  %177 = vst [vmem:[%s1317_s25] sm:$0x3] %v1213_v50 }
  0xfa   : > { %v1136_v54 = vpop.eup %1135  ;;  %v1067_v56 = vpop.f32.mrb[10].mxu0  ;;  %1159 = vpow2.f32 %v618_v13 }
  0xfb   : > { %v1093_v57 = vpop.f32.mrb[10].mxu1  ;;  %v360_v59 = vpop.f32.mrb[11].mxu0  ;;  %v411_v20 = vmul.f32 1.442695, %v1067_v56  ;;  %1161 = vpow2.f32 %v405_v17 }
  0xfc   : > { %v571_v60 = vpop.f32.mrb[11].mxu1  ;;  %427 = vadd.xlane.f32.xlu0 %v1134_v52  ;;  %v1138_v0 = vpop.eup %1137  ;;  %v622_v21 = vmul.f32 1.442695, %v1093_v57  ;;  %1163 = vpow2.f32 %v616_v19  ;;  %v409_v25 = vmul.f32 1.442695, %v360_v59 }
  0xfd   : > { %638 = vadd.xlane.f32.xlu1 %v1136_v54  ;;  %v1140_v3 = vpop.eup %1139  ;;  %1165 = vpow2.f32 %v411_v20  ;;  %v620_v27 = vmul.f32 1.442695, %v571_v60 }
  0xfe   : > { %v1070_v62 = vpop.f32.mrb[12].mxu0  ;;  %v1096_v63 = vpop.f32.mrb[12].mxu1  ;;  %1167 = vpow2.f32 %v622_v21 }
  0xff   : > { %v370_v1 = vpop.f32.mrb[13].mxu0  ;;  %v581_v2 = vpop.f32.mrb[13].mxu1  ;;  %v415_v28 = vmul.f32 1.442695, %v1070_v62  ;;  %v626_v29 = vmul.f32 1.442695, %v1096_v63  ;;  %1169 = vpow2.f32 %v409_v25 }
 0x100   : > { %425 = vadd.xlane.f32.xlu0 %v1138_v0  ;;  %v1142_v4 = vpop.eup %1141  ;;  %1171 = vpow2.f32 %v620_v27  ;;  %v413_v33 = vmul.f32 1.442695, %v370_v1  ;;  %v624_v35 = vmul.f32 1.442695, %v581_v2  ;;  %v1324_v0 = vand.u32 127, %v681_v61 }
 0x101   : > { %636 = vadd.xlane.f32.xlu1 %v1140_v3  ;;  %v1144_v6 = vpop.eup %1143  ;;  %1173 = vpow2.f32 %v415_v28 }
 0x102   : > { %v1309_v8 = vpop.f32.mrb[14].mxu1  ;;  %v1073_v9 = vpop.f32.mrb[14].mxu0  ;;  %1175 = vpow2.f32 %v626_v29  ;;  %v694_v3 = vadd.s32 4294967280, %v1324_v0  ;;  %v687_v5 = vadd.s32 4294967288, %v1324_v0  ;;  %v708_v10 = vadd.s32 4294967264, %v1324_v0 }
 0x103   : > { %v380_v11 = vpop.f32.mrb[15].mxu0  ;;  %v591_v12 = vpop.f32.mrb[15].mxu1  ;;  %v419_v41 = vmul.f32 1.442695, %v1073_v9  ;;  %v630_v43 = vmul.f32 1.442695, %v1309_v8 }
 0x104   : > { %431 = vadd.xlane.f32.xlu0 %v1142_v4  ;;  %v1146_v14 = vpop.eup %1145  ;;  %v417_v36 = vmul.f32 1.442695, %v380_v11  ;;  %v628_v37 = vmul.f32 1.442695, %v591_v12  ;;  %1177 = vpow2.f32 %v413_v33  ;;  %v1331_v4 = vshrl.u32 %v681_v61, 7 }
 0x105   : > { %642 = vadd.xlane.f32.xlu1 %v1144_v6  ;;  %v1148_v15 = vpop.eup %1147  ;;  %1179 = vpow2.f32 %v624_v35  ;;  %v701_v12 = vadd.s32 4294967272, %v1324_v0  ;;  %v722_v20 = vadd.s32 4294967248, %v1324_v0  ;;  %v729_v25 = vadd.s32 4294967240, %v1324_v0 }
 0x106   : > { %v1150_v16 = vpop.eup %1149  ;;  %1181 = vpow2.f32 %v417_v36  ;;  %v685_v7 = vsub.s32 %v1324_v0, %v1331_v4  ;;  %v697_v9 = vsub.s32 %v694_v3, %v1331_v4  ;;  %v690_v11 = vsub.s32 %v687_v5, %v1331_v4 }
 0x107   : > { %v1152_v18 = vpop.eup %1151  ;;  %1183 = vpow2.f32 %v628_v37  ;;  %v711_v19 = vsub.s32 %v708_v10, %v1331_v4  ;;  %v736_v29 = vadd.s32 4294967232, %v1324_v0  ;;  %v771_v10 = vadd.s32 4294967192, %v1324_v0 }
 0x108   : > { %429 = vadd.xlane.f32.xlu0 %v1146_v14  ;;  %v1154_v22 = vpop.eup %1153  ;;  %1185 = vpow2.f32 %v419_v41 }
 0x109   : > { %640 = vadd.xlane.f32.xlu1 %v1148_v15  ;;  %v1156_v23 = vpop.eup %1155  ;;  %1187 = vpow2.f32 %v630_v43  ;;  %v715_v15 = vadd.s32 4294967256, %v1324_v0  ;;  %v739_v43 = vsub.s32 %v736_v29, %v1331_v4 }
 0x10a   : > { %v1158_v24 = vpop.eup %1157 }
 0x10b   : > { %v1160_v26 = vpop.eup %1159  ;;  %v718_v28 = vsub.s32 %v715_v15, %v1331_v4 }
 0x10c   : > { %435 = vadd.xlane.f32.xlu0 %v1150_v16  ;;  %v1162_v30 = vpop.eup %1161 }
 0x10d   : > { %646 = vadd.xlane.f32.xlu1 %v1152_v18  ;;  %v1164_v31 = vpop.eup %1163 }
 0x10e   : > { %v1166_v32 = vpop.eup %1165 }
 0x10f   : > { %v1168_v34 = vpop.eup %1167 }
 0x110   : > { %433 = vadd.xlane.f32.xlu0 %v1154_v22  ;;  %v1170_v38 = vpop.eup %1169  ;;  %v704_v22 = vsub.s32 %v701_v12, %v1331_v4 }
 0x111   : > { %644 = vadd.xlane.f32.xlu1 %v1156_v23  ;;  %v1172_v39 = vpop.eup %1171 }
 0x112   : > { %v1174_v40 = vpop.eup %1173 }
 0x113   : > { %v1176_v42 = vpop.eup %1175 }
 0x114   : > { %439 = vadd.xlane.f32.xlu0 %v1158_v24  ;;  %v1178_v44 = vpop.eup %1177 }
 0x115   : > { %650 = vadd.xlane.f32.xlu1 %v1160_v26  ;;  %v1180_v45 = vpop.eup %1179 }
 0x116   : > { %v1182_v46 = vpop.eup %1181 }
 0x117   : > { %v1184_v47 = vpop.eup %1183 }
 0x118   : > { %437 = vadd.xlane.f32.xlu0 %v1162_v30  ;;  %v1186_v48 = vpop.eup %1185 }
 0x119   : > { %648 = vadd.xlane.f32.xlu1 %v1164_v31  ;;  %v1188_v49 = vpop.eup %1187 }
 0x11c   : > { %443 = vadd.xlane.f32.xlu0 %v1166_v32 }
 0x11d   : > { %654 = vadd.xlane.f32.xlu1 %v1168_v34  ;;  %v725_v34 = vsub.s32 %v722_v20, %v1331_v4 }
 0x120   : > { %441 = vadd.xlane.f32.xlu0 %v1170_v38 }
 0x121   : > { %652 = vadd.xlane.f32.xlu1 %v1172_v39  ;;  %v732_v39 = vsub.s32 %v729_v25, %v1331_v4  ;;  %v785_v25 = vadd.s32 4294967176, %v1324_v0 }
 0x124   : > { %447 = vadd.xlane.f32.xlu0 %v1174_v40 }
 0x125   : > { %658 = vadd.xlane.f32.xlu1 %v1176_v42  ;;  %v743_v42 = vadd.s32 4294967224, %v1324_v0 }
 0x128   : > { %445 = vadd.xlane.f32.xlu0 %v1178_v44 }
 0x129   : > { %656 = vadd.xlane.f32.xlu1 %v1180_v45 }
 0x12c   : > { %449 = vadd.xlane.f32.xlu0 %v1182_v46 }
 0x12d   : > { %660 = vadd.xlane.f32.xlu1 %v1184_v47 }
 0x130   : > { %451 = vadd.xlane.f32.xlu0 %v1186_v48  ;;  %v750_v48 = vadd.s32 4294967216, %v1324_v0 }
 0x131   : > { %662 = vadd.xlane.f32.xlu1 %v1188_v49 }
 0x181   : > { %v424_v51 = vpop.xlane.xlu0 %423 }
 0x182   : > { %v635_v52 = vpop.xlane.xlu1 %634  ;;  %v691_v21 = vrot.slane %v424_v51, %v690_v11 }
 0x183   : > { %v816_v24 = vrot.slane %v635_v52, %v690_v11 }
 0x185   : > { %v422_v53 = vpop.xlane.xlu0 %421 }
 0x186   : > { %v633_v54 = vpop.xlane.xlu1 %632  ;;  %v686_v14 = vrot.slane %v422_v53, %v685_v7  ;;  %v757_v53 = vadd.s32 4294967208, %v1324_v0 }
 0x187   : > { %v812_v17 = vrot.slane %v633_v54, %v685_v7 }
 0x188   : > { %v693_v27 = vsel %vm692_vm1, %v691_v21, %v686_v14  ;;  %v760_v7 = vsub.s32 %v757_v53, %v1331_v4 }
 0x189   : > { %v428_v55 = vpop.xlane.xlu0 %427  ;;  %v817_v31 = vsel %vm692_vm1, %v816_v24, %v812_v17  ;;  %v778_v17 = vadd.s32 4294967184, %v1324_v0 }
 0x18a   : > { %v639_v56 = vpop.xlane.xlu1 %638  ;;  %v705_v35 = vrot.slane %v428_v55, %v704_v22 }
 0x18b   : > { %v826_v38 = vrot.slane %v639_v56, %v704_v22  ;;  %v746_v56 = vsub.s32 %v743_v42, %v1331_v4 }
 0x18d   : > { %v426_v57 = vpop.xlane.xlu0 %425 }
 0x18e   : > { %v637_v58 = vpop.xlane.xlu1 %636  ;;  %v698_v18 = vrot.slane %v426_v57, %v697_v9 }
 0x18f   : > { %v821_v23 = vrot.slane %v637_v58, %v697_v9  ;;  %v764_v58 = vadd.s32 4294967200, %v1324_v0 }
 0x190   : > { %v700_v32 = vsel %vm699_vm2, %v698_v18, %v693_v27 }
 0x191   : > { %v1320_v59 = vpop.xlane.xlu0 %431  ;;  %v822_v36 = vsel %vm699_vm2, %v821_v23, %v817_v31  ;;  %v707_v41 = vsel %vm706_vm3, %v705_v35, %v700_v32  ;;  %v767_v12 = vsub.s32 %v764_v58, %v1331_v4  ;;  %v774_v23 = vsub.s32 %v771_v10, %v1331_v4 }
 0x192   : > { %v1322_v60 = vpop.xlane.xlu1 %642  ;;  %v827_v45 = vsel %vm706_vm3, %v826_v38, %v822_v36  ;;  %v719_v49 = vrot.slane %v1320_v59, %v718_v28  ;;  %v788_v35 = vsub.s32 %v785_v25, %v1331_v4 }
 0x193   : > { %v836_v52 = vrot.slane %v1322_v60, %v718_v28 }
 0x195   : > { %v430_v62 = vpop.xlane.xlu0 %429 }
 0x196   : > { %v641_v63 = vpop.xlane.xlu1 %640  ;;  %v712_v33 = vrot.slane %v430_v62, %v711_v19 }
 0x197   : > { %v831_v37 = vrot.slane %v641_v63, %v711_v19  ;;  %v753_v63 = vsub.s32 %v750_v48, %v1331_v4 }
 0x198   : > { %v714_v46 = vsel %vm713_vm4, %v712_v33, %v707_v41 }
 0x199   : > { %v1326_v1 = vpop.xlane.xlu0 %435  ;;  %v832_v50 = vsel %vm713_vm4, %v831_v37, %v827_v45  ;;  %v721_v55 = vsel %vm720_vm5, %v719_v49, %v714_v46  ;;  %v664_v49 = vld [vmem:[%s1317_s25] sm:$0x3] }
 0x19a   : > { %v1328_v2 = vpop.xlane.xlu1 %646  ;;  %v837_v61 = vsel %vm720_vm5, %v836_v52, %v832_v50  ;;  %v733_v3 = vrot.slane %v1326_v1, %v732_v39 }
 0x19d   : > { %v1334_v6 = vpop.xlane.xlu0 %433 }
 0x19e   : > { %v1338_v8 = vpop.xlane.xlu1 %644  ;;  %v726_v47 = vrot.slane %v1334_v6, %v725_v34  ;;  %v846_v6 = vrot.slane %v1328_v2, %v732_v39 }
 0x19f   : > { %v841_v51 = vrot.slane %v1338_v8, %v725_v34 }
 0x1a0   : > { %v728_v59 = vsel %vm727_vm6, %v726_v47, %v721_v55 }
 0x1a1   : > { %v1344_v13 = vpop.xlane.xlu0 %439  ;;  %v842_v60 = vsel %vm727_vm6, %v841_v51, %v837_v61  ;;  %v735_v9 = vsel %vm734_vm7, %v733_v3, %v728_v59 }
 0x1a2   : > { %v1347_v16 = vpop.xlane.xlu1 %650  ;;  %v847_v14 = vsel %vm734_vm7, %v846_v6, %v842_v60  ;;  %v747_v18 = vrot.slane %v1344_v13, %v746_v56  ;;  %v781_v13 = vsub.s32 %v778_v17, %v1331_v4 }
 0x1a3   : > { %v856_v20 = vrot.slane %v1347_v16, %v746_v56 }
 0x1a5   : > { %v438_v26 = vpop.xlane.xlu0 %437 }
 0x1a6   : > { %v649_v30 = vpop.xlane.xlu1 %648  ;;  %v740_v62 = vrot.slane %v438_v26, %v739_v43 }
 0x1a7   : > { %v851_v5 = vrot.slane %v649_v30, %v739_v43 }
 0x1a8   : > { %v742_v15 = vsel %vm741_vm8, %v740_v62, %v735_v9 }
 0x1a9   : > { %v1359_v40 = vpop.xlane.xlu0 %443  ;;  %v852_v2 = vsel %vm741_vm8, %v851_v5, %v847_v14  ;;  %v749_v22 = vsel %vm748_vm9, %v747_v18, %v742_v15 }
 0x1aa   : > { %v1364_v44 = vpop.xlane.xlu1 %654  ;;  %v857_v26 = vsel %vm748_vm9, %v856_v20, %v852_v2  ;;  %v761_v29 = vrot.slane %v1359_v40, %v760_v7 }
 0x1ab   : > { %v866_v31 = vrot.slane %v1364_v44, %v760_v7 }
 0x1ad   : > { %v442_v54 = vpop.xlane.xlu0 %441 }
 0x1ae   : > { %v653_v57 = vpop.xlane.xlu1 %652  ;;  %v754_v1 = vrot.slane %v442_v54, %v753_v63 }
 0x1af   : > { %v861_v19 = vrot.slane %v653_v57, %v753_v63 }
 0x1b0   : > { %v756_v27 = vsel %vm755_vm10, %v754_v1, %v749_v22 }
 0x1b1   : > { %v448_v8 = vpop.xlane.xlu0 %447  ;;  %v862_v30 = vsel %vm755_vm10, %v861_v19, %v857_v26  ;;  %v763_v33 = vsel %vm762_vm11, %v761_v29, %v756_v27 }
 0x1b2   : > { %v659_v11 = vpop.xlane.xlu1 %658  ;;  %v867_v0 = vsel %vm762_vm11, %v866_v31, %v862_v30  ;;  %v775_v38 = vrot.slane %v448_v8, %v774_v23 }
 0x1b3   : > { %v876_v41 = vrot.slane %v659_v11, %v774_v23 }
 0x1b5   : > { %v446_v21 = vpop.xlane.xlu0 %445 }
 0x1b6   : > { %v657_v24 = vpop.xlane.xlu1 %656  ;;  %v768_v28 = vrot.slane %v446_v21, %v767_v12 }
 0x1b7   : > { %v871_v16 = vrot.slane %v657_v24, %v767_v12 }
 0x1b8   : > { %v770_v36 = vsel %vm769_vm12, %v768_v28, %v763_v33 }
 0x1b9   : > { %v450_v32 = vpop.xlane.xlu0 %449  ;;  %v872_v39 = vsel %vm769_vm12, %v871_v16, %v867_v0  ;;  %v777_v43 = vsel %vm776_vm13, %v775_v38, %v770_v36 }
 0x1ba   : > { %v661_v34 = vpop.xlane.xlu1 %660  ;;  %v782_v37 = vrot.slane %v450_v32, %v781_v13  ;;  %v877_v46 = vsel %vm776_vm13, %v876_v41, %v872_v39 }
 0x1bb   : > { %v881_v40 = vrot.slane %v661_v34, %v781_v13 }
 0x1bc   : > { %v784_v47 = vsel %vm783_vm14, %v782_v37, %v777_v43 }
 0x1bd   : > { %v452_v42 = vpop.xlane.xlu0 %451  ;;  %v882_v48 = vsel %vm783_vm14, %v881_v40, %v877_v46 }
 0x1be   : > { %v663_v44 = vpop.xlane.xlu1 %662  ;;  %v789_v45 = vrot.slane %v452_v42, %v788_v35 }
 0x1bf   : > { %v886_v4 = vrot.slane %v663_v44, %v788_v35 }
 0x1c0   : > { %v791_v50 = vsel %vm790_vm15, %v789_v45, %v784_v47 }
 0x1c1   : > { %v887_v51 = vsel %vm790_vm15, %v886_v4, %v882_v48 }
 0x1c2   : > { %v890_v52 = vsel %vm889_vm0, %v791_v50, %v887_v51 }
 0x1c3   : > { %v891_v53 = vadd.f32 %v890_v52, %v664_v49 }
 0x1c5   : > { %892 = vst [vmem:[%s1317_s25] sm:$0x3] %v891_v53 }
 0x1c6 PF: > { %s12_s11 = sadd.s32 1, %s1211_s11   ;;  %s1412_s9 = smov %s1207_s10 }
 0x1c7   : > { %p9_p6 = scmp.ge.s32.totalorder %s12_s11, 6   ;;  %s1413_s10 = smov %s1415_s12 }
 0x1c9   :  { %11 = sbr.rel (!%p9_p6) target bundleno = 2 (0x2), region = 66 }

</bundles_post_ra>
